<compile_context>
chip_gen: v7x
topology: tpu7x:2x2x1
jax: 0.10.0
libtpu: 0.0.40
codegen_flags: <defaults>
</compile_context>

<pallas_src>
import math

import jax
import jax.numpy as jnp
from jax.experimental import pallas as pl
from jax.experimental.pallas import tpu as pltpu


# ---------------------------------------------------------------------------
# Kernel
# ---------------------------------------------------------------------------
def _periodic_kernel(x_ref, e_ref, w_ref, p_ref, o_ref):
    """One (batch-tile, feature-tile) grid step.

    x_ref: (TB, TF)     input rows (any float dtype; math in f32)
    e_ref: (3*TF, Ct)   bf16 {0,1} expansion block (identical for every feature tile)
    w_ref: (1, Ct)      f32  2*pi*weight per output column
    p_ref: (1, Ct)      f32  phase: 0 for cos columns, pi/2 for sin columns
    o_ref: (TB, Ct)     lane-dense output slab, Ct = TF*2K
    """
    x = x_ref[...].astype(jnp.float32)

    # 3-piece bf16 split: x ~= hi + mid + lo, reconstructed to ~f32 accuracy
    # by the exact {0,1} bf16 expansion matmul with f32 accumulation.
    x_hi = x.astype(jnp.bfloat16)
    r1 = x - x_hi.astype(jnp.float32)
    x_mid = r1.astype(jnp.bfloat16)
    x_lo = (r1 - x_mid.astype(jnp.float32)).astype(jnp.bfloat16)

    # Single stacked matmul (one MXU pass, no extra (TB, Ct) f32 adds): rows
    # [0:TF] of e_ref hit x_hi, [TF:2TF] x_mid, [2TF:3TF] x_lo (all three row
    # blocks are identical one-hot blocks, so the stacking order is immaterial).
    lhs = jnp.concatenate([x_hi, x_mid, x_lo], axis=-1)                 # (TB, 3*TF)
    xe = jnp.dot(lhs, e_ref[...], preferred_element_type=jnp.float32)   # (TB, Ct) = x[b, c // 2K]

    # z = 2*pi*w*x, shifted by pi/2 on sin columns: cos(z - pi/2) == sin(z),
    # so exactly one transcendental per output element.
    z = xe * w_ref[...] - p_ref[...]
    o_ref[...] = jnp.cos(z).astype(o_ref.dtype)


# ---------------------------------------------------------------------------
# Tiling / VMEM planning
# ---------------------------------------------------------------------------
def _round_up(v: int, m: int) -> int:
    return -(-v // m) * m


def _round_down(v: int, m: int) -> int:
    return (v // m) * m


def _vmem_physical_bytes() -> int:
    """Physical per-core VMEM of the running generation (fallback: v7x's 64 MiB)."""
    try:
        cap = getattr(pltpu.get_tpu_info(), "vmem_capacity_bytes", None)
        if cap:
            return int(cap)
    except Exception:
        pass
    return 64 * 1024 * 1024


def _choose_feature_tile(n_features: int) -> int:
    """Feature tile TF.

    For large F the one-hot expansion is block-diagonal and every feature tile
    multiplies by the SAME dense (3*TF, TF*2K) block, so E's VMEM footprint is
    O(TF^2*K) and MXU flops are O(TF) per output element instead of O(F).
    """
    if n_features <= 256 or n_features % 128 != 0:
        # Small F (or not lane-aligned): single feature tile; block dim equal
        # to the full array dim is always legal.
        # TODO(synk): pad F up to a multiple of 128 to enable tiling for large,
        # non-aligned feature counts.
        return n_features
    for tf in (256, 128):
        if n_features % tf == 0:
            return tf
    return n_features


def _plan_tiles(n_rows: int, tf: int, k: int, x_itemsize: int, out_itemsize: int):
    """Pick the batch tile TB and an explicit scoped-VMEM limit.

    Honest working-set accounting: double-buffered x and out tiles, the
    resident expansion block (single-buffered), the tiny w/phase blocks, and
    the in-kernel f32 intermediates (xe / z / cos result ~ 3 f32 output rows).
    """
    ct = tf * 2 * k
    ct_pad = _round_up(ct, 128)
    tf_pad = _round_up(tf, 128)

    e_bytes = _round_up(3 * tf, 8) * ct_pad * 2          # bf16 expansion, 1 buffer (Buffered(1))
    wp_bytes = 2 * 2 * 8 * ct_pad * 4                    # w + phase, 2 buffers each, sublane-padded
    resident = e_bytes + wp_bytes

    row_x = tf_pad * max(x_itemsize, 4)                  # x tile row, lane padded
    row_out = ct_pad * out_itemsize                      # lane-dense output row
    row_tmp = 3 * ct_pad * 4 + 5 * tf_pad * 4            # f32 xe/z/cos + bf16 split temporaries
    per_row = 2 * row_x + 2 * row_out + row_tmp          # x2: double buffering of x and out

    physical = _vmem_physical_bytes()
    # Fits v7x's 64 MiB physical VMEM; capped at 48 MiB on v5e/v6e (128 MiB).
    budget = min(int(physical * 0.70), 48 * 1024 * 1024)

    tb = max(8, _round_down(max(budget - resident, 0) // per_row, 8))

    # Never collapse to a 1-step grid when there is enough work: a multi-step
    # "parallel" batch axis keeps the output writeback overlapped with compute
    # and gives both v7x TensorCores rows.  >= 4 steps for B >= 256, >= 2 for
    # B >= 64; tiny inputs stay single-step.
    if n_rows >= 256:
        tb = min(tb, max(64, _round_up(pl.cdiv(n_rows, 4), 8)))
    elif n_rows >= 64:
        tb = min(tb, max(32, _round_up(pl.cdiv(n_rows, 2), 8)))
    tb = min(tb, _round_up(n_rows, 8))

    need = resident + tb * per_row
    vmem_limit = min(int(need * 1.25) + (4 << 20), physical - (8 << 20))
    vmem_limit = max(vmem_limit, 16 << 20)
    return tb, int(vmem_limit)


# ---------------------------------------------------------------------------
# Wrapper
# ---------------------------------------------------------------------------
def periodic_forward(x: jax.Array, weight: jax.Array, *, out_dtype=None) -> jax.Array:
    """_Periodic forward: x (..., F), weight (F, K) -> (..., F, 2K).

    out = concat([cos(2*pi*w*x[..., None]), sin(2*pi*w*x[..., None])], -1).
    Pass out_dtype=jnp.bfloat16 for the store-bound fast path (math stays f32
    in-kernel, only the final store casts) -- up to ~2x on v5e/v6e where the
    kernel is HBM-write-bound at f32 output.
    """
    if x.ndim < 2:
        raise ValueError(f"The input must have at least two dimensions, however: x.ndim={x.ndim!r}")
    n_features, k = weight.shape
    if x.shape[-1] != n_features:
        raise ValueError(f"x.shape[-1]={x.shape[-1]} must equal n_features={n_features}")
    out_dtype = jnp.dtype(x.dtype if out_dtype is None else out_dtype)

    lead = x.shape[:-1]
    b = math.prod(lead)
    c = n_features * 2 * k
    x2 = x.reshape(b, n_features)

    tf = _choose_feature_tile(n_features)
    ct = tf * 2 * k
    n_ft = n_features // tf

    # Tiny per-column metadata built from `weight` only (no batch-sized HBM
    # traffic).  e3 is the shared block-diagonal expansion block, stacked 3x
    # along rows to match the hi/mid/lo bf16 split of x inside the kernel.
    loc_feat = jnp.arange(ct) // (2 * k)
    e = (jnp.arange(tf)[:, None] == loc_feat[None, :]).astype(jnp.bfloat16)     # (TF, Ct)
    e3 = jnp.concatenate([e, e, e], axis=0)                                      # (3*TF, Ct)

    cols = jnp.arange(c)
    w_wide = ((2.0 * math.pi)                                                    # fold 2*pi here
              * jnp.concatenate([weight, weight], axis=1).astype(jnp.float32)
              ).reshape(1, c)                                                    # (1, C)
    phase = jnp.where((cols % (2 * k)) < k, 0.0, 0.5 * math.pi
                      ).astype(jnp.float32).reshape(1, c)                        # (1, C)

    x_itemsize = jnp.dtype(x.dtype).itemsize
    out_itemsize = out_dtype.itemsize
    tb, vmem_limit = _plan_tiles(b, tf, k, x_itemsize, out_itemsize)
    grid = (pl.cdiv(b, tb), n_ft)

    cost = pl.CostEstimate(
        flops=2 * b * 3 * tf * c,            # one stacked (TB,3TF)x(3TF,Ct) matmul per element row
        transcendentals=b * c,               # one cos per output element
        bytes_accessed=(b * n_features * x_itemsize * n_ft
                        + b * c * out_itemsize + int(e3.size) * 2 + 2 * c * 4),
    )
    # TODO(synk): when n_ft > 1, x is re-read once per feature tile; if that
    # ever shows on the roofline, switch x to a (TB, F) block with a constant
    # feature index and slice the feature chunk in-kernel.

    def run(single_buffer_e: bool):
        e_kwargs = {}
        if single_buffer_e and hasattr(pl, "Buffered"):
            # Grid-invariant expansion block: single-buffer it so it does not
            # reserve 2x its VMEM footprint.
            e_kwargs = dict(pipeline_mode=pl.Buffered(1))
        return pl.pallas_call(
            _periodic_kernel,
            out_shape=jax.ShapeDtypeStruct((b, c), out_dtype),
            grid=grid,
            in_specs=[
                pl.BlockSpec((tb, tf), lambda i, j: (i, j)),                    # x tile
                pl.BlockSpec((3 * tf, ct), lambda i, j: (0, 0), **e_kwargs),    # expansion (resident)
                pl.BlockSpec((1, ct), lambda i, j: (0, j)),                     # 2*pi*weight columns
                pl.BlockSpec((1, ct), lambda i, j: (0, j)),                     # phase bias
            ],
            out_specs=pl.BlockSpec((tb, ct), lambda i, j: (i, j)),              # lane-dense output
            compiler_params=pltpu.CompilerParams(
                dimension_semantics=("parallel", "parallel"),   # batch axis -> megacore / dual-TC
                vmem_limit_bytes=vmem_limit,
            ),
            cost_estimate=cost,
        )(x2, e3, w_wide, phase)

    try:
        out2 = run(True)
    except Exception:
        # Fallback for JAX versions where BlockSpec.pipeline_mode / Buffered(1)
        # is unavailable; only costs the extra (small) VMEM reservation for e3.
        out2 = run(False)

    # Free view reshape: (B, F*2K) and (..., F, 2K) share the same HBM layout.
    return out2.reshape(*lead, n_features, 2 * k)


# ---------------------------------------------------------------------------
# Parameter init (nn.init.trunc_normal_ equivalent) and pure-JAX reference
# ---------------------------------------------------------------------------
def init_periodic_weight(key, n_features: int, k: int, sigma: float) -> jax.Array:
    """Stand-in for nn.init.trunc_normal_(w, 0, sigma, -3*sigma, 3*sigma)."""
    if sigma <= 0.0:
        raise ValueError(f"sigma must be positive, however: sigma={sigma!r}")
    w = jax.random.truncated_normal(key, -3.0, 3.0, (n_features, k), dtype=jnp.float32)
    return w * sigma


def _reference(x, weight):
    z = 2.0 * math.pi * weight * x[..., None]
    return jnp.concatenate([jnp.cos(z), jnp.sin(z)], axis=-1)


if __name__ == "__main__":
    key = jax.random.PRNGKey(0)
    k_x, k_w = jax.random.split(key)

    batch = 2
    seq = 4
    n_features = 16
    k = 8
    sigma = 0.5

    x = jax.random.normal(k_x, (batch, seq, n_features), dtype=jnp.float32)
    weight = init_periodic_weight(k_w, n_features, k, sigma)

    out = jax.block_until_ready(periodic_forward(x, weight))
    ref = _reference(x, weight)

    assert out.shape == (batch, seq, n_features, 2 * k), out.shape
    # Tolerance covers the 3-piece bf16 split reconstruction (~1e-6) and the
    # cos(z - pi/2) == sin(z) phase identity (~1e-6 at these |z|).
    assert jnp.allclose(out, ref, atol=2e-5, rtol=2e-5), "mismatch vs reference (f32 path)"

    # Store-bound fast path: bf16 output (math stays f32 in-kernel).
    out_bf16 = jax.block_until_ready(periodic_forward(x, weight, out_dtype=jnp.bfloat16))
    assert out_bf16.dtype == jnp.bfloat16
    assert jnp.allclose(out_bf16.astype(jnp.float32), ref, atol=1.5e-2, rtol=1.5e-2), \
        "mismatch vs reference (bf16 path)"

    print("KERNEL_OK")
</pallas_src>

<mosaic_0001>
module attributes {stable_mosaic.version = 11 : i64} {
  func.func @_periodic_kernel(%arg0: i32, %arg1: i32, %arg2: memref<8x16xf32, #tpu.memory_space<vmem>>, %arg3: memref<48x256xbf16, #tpu.memory_space<vmem>>, %arg4: memref<1x256xf32, #tpu.memory_space<vmem>>, %arg5: memref<1x256xf32, #tpu.memory_space<vmem>>, %arg6: memref<8x256xf32, #tpu.memory_space<vmem>>) attributes {dimension_semantics = [#tpu.dimension_semantics<parallel>, #tpu.dimension_semantics<parallel>], iteration_bounds = array<i64: 1, 1>, scalar_prefetch = 0 : i64, scratch_operands = 0 : i64, tpu.core_type = #tpu.core_type<tc>, window_params = [{transform_indices = @transform_0, window_bounds = array<i64: 8, 16>}, {pipeline_mode = #tpu.pipeline_mode<synchronous>, transform_indices = @transform_1, window_bounds = array<i64: 48, 256>}, {transform_indices = @transform_2, window_bounds = array<i64: 1, 256>}, {transform_indices = @transform_3, window_bounds = array<i64: 1, 256>}, {transform_indices = @transform_4, window_bounds = array<i64: 8, 256>}]} {
    %c0 = arith.constant 0 : index
    %c0_0 = arith.constant 0 : index
    %0 = vector.load %arg2[%c0, %c0_0] : memref<8x16xf32, #tpu.memory_space<vmem>>, vector<8x16xf32>
    %1 = arith.truncf %0 : vector<8x16xf32> to vector<8x16xbf16>
    %2 = arith.extf %1 : vector<8x16xbf16> to vector<8x16xf32>
    %3 = arith.subf %0, %2 : vector<8x16xf32>
    %4 = arith.truncf %3 : vector<8x16xf32> to vector<8x16xbf16>
    %5 = arith.extf %4 : vector<8x16xbf16> to vector<8x16xf32>
    %6 = arith.subf %3, %5 : vector<8x16xf32>
    %7 = arith.truncf %6 : vector<8x16xf32> to vector<8x16xbf16>
    %8 = tpu.concatenate %1, %4, %7 in 1 : vector<8x16xbf16>, vector<8x16xbf16>, vector<8x16xbf16> -> vector<8x48xbf16>
    %c0_1 = arith.constant 0 : index
    %c0_2 = arith.constant 0 : index
    %9 = vector.load %arg3[%c0_1, %c0_2] : memref<48x256xbf16, #tpu.memory_space<vmem>>, vector<48x256xbf16>
    %cst = arith.constant dense<0.000000e+00> : vector<8x256xf32>
    %10 = tpu.matmul %8, %9, %cst {dimension_numbers = #tpu.dot_dimension_numbers<[1], [0], [0], [1], [0, 0, 1, 1], [], []>} : vector<8x48xbf16>, vector<48x256xbf16>, vector<8x256xf32> -> vector<8x256xf32>
    %c0_3 = arith.constant 0 : index
    %c0_4 = arith.constant 0 : index
    %11 = vector.load %arg4[%c0_3, %c0_4] : memref<1x256xf32, #tpu.memory_space<vmem>>, vector<1x256xf32>
    %12 = vector.broadcast %11 : vector<1x256xf32> to vector<8x256xf32>
    %13 = arith.mulf %10, %12 : vector<8x256xf32>
    %c0_5 = arith.constant 0 : index
    %c0_6 = arith.constant 0 : index
    %14 = vector.load %arg5[%c0_5, %c0_6] : memref<1x256xf32, #tpu.memory_space<vmem>>, vector<1x256xf32>
    %15 = vector.broadcast %14 : vector<1x256xf32> to vector<8x256xf32>
    %16 = arith.subf %13, %15 : vector<8x256xf32>
    %17 = math.cos %16 : vector<8x256xf32>
    %c0_7 = arith.constant 0 : index
    %c0_8 = arith.constant 0 : index
    %18 = vector.load %arg6[%c0_7, %c0_8] : memref<8x256xf32, #tpu.memory_space<vmem>>, vector<8x256xf32>
    tpu.vector_store %arg6[%c0_7, %c0_8], %17 {strides = array<i32>} : memref<8x256xf32, #tpu.memory_space<vmem>>, vector<8x256xf32>,
    return
  }
  func.func @transform_0(%arg0: i32, %arg1: i32) -> (i32, i32) {
    %c0_i32 = arith.constant 0 : i32
    return %arg0, %arg1 : i32, i32
  }
  func.func @transform_1(%arg0: i32, %arg1: i32) -> (i32, i32) {
    %c0_i32 = arith.constant 0 : i32
    %c0_i32_0 = arith.constant 0 : i32
    %c0_i32_1 = arith.constant 0 : i32
    return %c0_i32, %c0_i32_0 : i32, i32
  }
  func.func @transform_2(%arg0: i32, %arg1: i32) -> (i32, i32) {
    %c0_i32 = arith.constant 0 : i32
    %c0_i32_0 = arith.constant 0 : i32
    return %c0_i32, %arg1 : i32, i32
  }
  func.func @transform_3(%arg0: i32, %arg1: i32) -> (i32, i32) {
    %c0_i32 = arith.constant 0 : i32
    %c0_i32_0 = arith.constant 0 : i32
    return %c0_i32, %arg1 : i32, i32
  }
  func.func @transform_4(%arg0: i32, %arg1: i32) -> (i32, i32) {
    %c0_i32 = arith.constant 0 : i32
    return %arg0, %arg1 : i32, i32
  }
}

module attributes {stable_mosaic.version = 11 : i64} {
  func.func @_periodic_kernel(%arg0: i32, %arg1: i32, %arg2: memref<8x16xf32, #tpu.memory_space<vmem>>, %arg3: memref<48x256xbf16, #tpu.memory_space<vmem>>, %arg4: memref<1x256xf32, #tpu.memory_space<vmem>>, %arg5: memref<1x256xf32, #tpu.memory_space<vmem>>, %arg6: memref<8x256xf32, #tpu.memory_space<vmem>>) attributes {dimension_semantics = [#tpu.dimension_semantics<parallel>, #tpu.dimension_semantics<parallel>], iteration_bounds = array<i64: 1, 1>, scalar_prefetch = 0 : i64, scratch_operands = 0 : i64, tpu.core_type = #tpu.core_type<tc>, window_params = [{transform_indices = @transform_0, window_bounds = array<i64: 8, 16>}, {pipeline_mode = #tpu.pipeline_mode<synchronous>, transform_indices = @transform_1, window_bounds = array<i64: 48, 256>}, {transform_indices = @transform_2, window_bounds = array<i64: 1, 256>}, {transform_indices = @transform_3, window_bounds = array<i64: 1, 256>}, {transform_indices = @transform_4, window_bounds = array<i64: 8, 256>}]} {
    %c0 = arith.constant 0 : index
    %c0_0 = arith.constant 0 : index
    %0 = vector.load %arg2[%c0, %c0_0] : memref<8x16xf32, #tpu.memory_space<vmem>>, vector<8x16xf32>
    %1 = arith.truncf %0 : vector<8x16xf32> to vector<8x16xbf16>
    %2 = arith.extf %1 : vector<8x16xbf16> to vector<8x16xf32>
    %3 = arith.subf %0, %2 : vector<8x16xf32>
    %4 = arith.truncf %3 : vector<8x16xf32> to vector<8x16xbf16>
    %5 = arith.extf %4 : vector<8x16xbf16> to vector<8x16xf32>
    %6 = arith.subf %3, %5 : vector<8x16xf32>
    %7 = arith.truncf %6 : vector<8x16xf32> to vector<8x16xbf16>
    %8 = tpu.concatenate %1, %4, %7 in 1 : vector<8x16xbf16>, vector<8x16xbf16>, vector<8x16xbf16> -> vector<8x48xbf16>
    %c0_1 = arith.constant 0 : index
    %c0_2 = arith.constant 0 : index
    %9 = vector.load %arg3[%c0_1, %c0_2] : memref<48x256xbf16, #tpu.memory_space<vmem>>, vector<48x256xbf16>
    %cst = arith.constant dense<0.000000e+00> : vector<8x256xf32>
    %10 = tpu.matmul %8, %9, %cst {dimension_numbers = #tpu.dot_dimension_numbers<[1], [0], [0], [1], [0, 0, 1, 1], [], []>} : vector<8x48xbf16>, vector<48x256xbf16>, vector<8x256xf32> -> vector<8x256xf32>
    %c0_3 = arith.constant 0 : index
    %c0_4 = arith.constant 0 : index
    %11 = vector.load %arg4[%c0_3, %c0_4] : memref<1x256xf32, #tpu.memory_space<vmem>>, vector<1x256xf32>
    %12 = vector.broadcast %11 : vector<1x256xf32> to vector<8x256xf32>
    %13 = arith.mulf %10, %12 : vector<8x256xf32>
    %c0_5 = arith.constant 0 : index
    %c0_6 = arith.constant 0 : index
    %14 = vector.load %arg5[%c0_5, %c0_6] : memref<1x256xf32, #tpu.memory_space<vmem>>, vector<1x256xf32>
    %15 = vector.broadcast %14 : vector<1x256xf32> to vector<8x256xf32>
    %16 = arith.subf %13, %15 : vector<8x256xf32>
    %17 = math.cos %16 : vector<8x256xf32>
    %c0_7 = arith.constant 0 : index
    %c0_8 = arith.constant 0 : index
    %18 = vector.load %arg6[%c0_7, %c0_8] : memref<8x256xf32, #tpu.memory_space<vmem>>, vector<8x256xf32>
    tpu.vector_store %arg6[%c0_7, %c0_8], %17 {strides = array<i32>} : memref<8x256xf32, #tpu.memory_space<vmem>>, vector<8x256xf32>,
    return
  }
  func.func @transform_0(%arg0: i32, %arg1: i32) -> (i32, i32) {
    %c0_i32 = arith.constant 0 : i32
    return %arg0, %arg1 : i32, i32
  }
  func.func @transform_1(%arg0: i32, %arg1: i32) -> (i32, i32) {
    %c0_i32 = arith.constant 0 : i32
    %c0_i32_0 = arith.constant 0 : i32
    %c0_i32_1 = arith.constant 0 : i32
    return %c0_i32, %c0_i32_0 : i32, i32
  }
  func.func @transform_2(%arg0: i32, %arg1: i32) -> (i32, i32) {
    %c0_i32 = arith.constant 0 : i32
    %c0_i32_0 = arith.constant 0 : i32
    return %c0_i32, %arg1 : i32, i32
  }
  func.func @transform_3(%arg0: i32, %arg1: i32) -> (i32, i32) {
    %c0_i32 = arith.constant 0 : i32
    %c0_i32_0 = arith.constant 0 : i32
    return %c0_i32, %arg1 : i32, i32
  }
  func.func @transform_4(%arg0: i32, %arg1: i32) -> (i32, i32) {
    %c0_i32 = arith.constant 0 : i32
    return %arg0, %arg1 : i32, i32
  }
}

</mosaic_0001>

<bundles_post_ra>
// kernel: tpu_custom_call.1
= control target key start
LH: loop header
LB: loop body
LE: loop exit
PB: predicated region body
PF: predicated region fallthrough
CT: control target
= control target key end

     0   :  { %9 = vsyncpa [#allocation3], 0  ;;  %s690_s0 = inlined_call_operand.hbm [shape: f32[8,16], index: 0, kind: input, shape index: {}]   ;;  %s691_s1 = inlined_call_operand.hbm [shape: bf16[48,256], index: 1, kind: input, shape index: {}]   ;;  %s692_s2 = inlined_call_operand.vmem [shape: f32[1,256], index: 2, kind: input, shape index: {}]   ;;  %s693_s3 = inlined_call_operand.vmem [shape: f32[1,256], index: 3, kind: input, shape index: {}]   ;;  %s694_s4 = inlined_call_operand.hbm [shape: f32[8,256], index: 4, kind: output, shape index: {}]  }
   0x1   :  { %10 = vsyncpa [#allocation6], 0 }
   0x2   :  { %11 = vsyncpa [#allocation4], 0  ;;  %s524_s15 = smov [#allocation2]   ;;  %s525_s17 = smov [#allocation5]  }
   0x3   :  { %s18_s16 = sshll.u32 %s524_s15, 4  ;;  %s27_s18 = sshll.u32 %s525_s17, 4  ;;  %s19_s16 = int_to_ptr.vmem [resolvable:$true] %s18_s16  ;;  %s563_s18 = int_to_ptr.vmem [resolvable:$true] %s27_s18 }
   0x4   :  { %s452_s21 = scalar_lea.hbm %s690_s0, 128 }
   0x5   :  { %p453_p0 = scmp.ne.s32.totalorder %s690_s0, %s452_s21  ;;  %p456_p1 = scmp.lt.u32.totalorder %s452_s21, %s690_s0 }
   0x7   :  { %p458_p2 = pnand %p456_p1, %p453_p0 }
   0x9   :  { %461 = shalt.err (!%p458_p2)
}
   0xa   :  { %s462_s26 = scalar_lea.vmem %s19_s16, 128  ;;  %p467_p4 = scmp.lt.s32.totalorder %s19_s16, %s19_s16 }
   0xb   :  { %p463_p3 = scmp.ne.s32.totalorder %s19_s16, %s462_s26  ;;  %p468_p5 = scmp.lt.s32.totalorder %s462_s26, %s462_s26 }
   0xd   :  { %p469_p6 = por %p468_p5, %p467_p4 }
   0xf   :  { %p470_p7 = pnand %p469_p6, %p463_p3 }
  0x11   :  { %473 = shalt.err (!%p470_p7)
}
  0x12   :  { %21 = dma.hbm_to_vmem [thread:$0]  %s690_s0, 128, %s19_s16, [#allocation3]  }
  0x13   :  { %s474_s5 = scalar_lea.hbm %s691_s1, 768 }
  0x14   :  { %p475_p8 = scmp.ne.s32.totalorder %s691_s1, %s474_s5  ;;  %p478_p9 = scmp.lt.u32.totalorder %s474_s5, %s691_s1 }
  0x16   :  { %p480_p10 = pnand %p478_p9, %p475_p8 }
  0x18   :  { %483 = shalt.err (!%p480_p10)
}
  0x19   :  { %s484_s10 = scalar_lea.vmem %s563_s18, 768  ;;  %p489_p12 = scmp.lt.s32.totalorder %s563_s18, %s563_s18 }
  0x1a   :  { %p485_p11 = scmp.ne.s32.totalorder %s563_s18, %s484_s10  ;;  %p490_p13 = scmp.lt.s32.totalorder %s484_s10, %s484_s10 }
  0x1c   :  { %p491_p0 = por %p490_p13, %p489_p12 }
  0x1e   :  { %p492_p1 = pnand %p491_p0, %p485_p11 }
  0x20   :  { %495 = shalt.err (!%p492_p1)
}
  0x21   :  { %s526_s0 = smov 128   ;;  %s527_s11 = smov 8  }
  0x22   :  { %33 = dma.hbm_to_vmem [thread:$0]  %s691_s1, 768, %s563_s18, [#allocation6], %s526_s0, %s526_s0, %s527_s11  }
  0x23   :  { %518 = dma.done.wait [#allocation3], 128  }
  0x24   :  { %519 = vsyncadd [#allocation3], 4294967168 }
  0x25   :  { %520 = dma.done.wait [#allocation6], 768  }
  0x26   :  { %521 = vsyncadd [#allocation6], 4294966528  ;;  %v45_v0 = vld [vmem:[#allocation2] sm:$0xff]  ;;  %v435_v2 = vld [vmem:[#allocation5 + $0x4] ss:$8 sps:$4 sm:$0xff]   ;;  %v528_v5 = vmov 0   ;;  %v148_v19 = vlaneseq }
  0x27   :  { %v46_v1 = vpack.c.bf16 %v45_v0, %v45_v0  ;;  %v437_v3 = vld [vmem:[#allocation5] ss:$8 sps:$4 sm:$0xff]   ;;  %v438_v4 = vld [vmem:[#allocation5 + $0x14] ss:$8 sps:$4 sm:$0xff]   ;;  %137 = vmatprep.mubr.bf16.mxu0 %v528_v5  ;;  %105 = vmatprep.subr.bf16.mxu0 %v435_v2  ;;  %v440_v7 = vld [vmem:[#allocation5 + $0x10] ss:$8 sps:$4 sm:$0xff]  }
  0x28   :  { %106 = vmatpush1.bf16.msra.mxu0 %v437_v3  ;;  %v441_v9 = vld [vmem:[#allocation5 + $0x24] ss:$8 sps:$4 sm:$0xff]   ;;  %v443_v11 = vld [vmem:[#allocation5 + $0x20] ss:$8 sps:$4 sm:$0xff]   ;;  %s529_s1 = smov 16   ;;  %s530_s14 = smov 32  }
  0x29   :  { %v47_v6 = vunpack.c.l.bf16 %v46_v1  ;;  %107 = vmatprep.subr.bf16.mxu0 %v438_v4  ;;  %vm59_vm0 = vcmask 130048   ;;  %vm63_vm1 = vcmask 261120   ;;  %vm102_vm2 = vcmask 392192   ;;  %v146_v22 = vld [vmem:[%s692_s2] sm:$0x3]  ;;  %s537_s2 = smov [#allocation7]  }
  0x2a   :  { %v149_v20 = vshrl.u32 %v148_v19, 7  ;;  %v160_v24 = vld [vmem:[%s693_s3] sm:$0x3]  ;;  %v531_v57 = vmov 683565275   ;;  %s388_s3 = sshll.u32 %s537_s2, 4  ;;  %s389_s3 = int_to_ptr.vmem [resolvable:$true] %s388_s3 }
  0x2b   :  { %v48_v8 = vsub.f32 %v45_v0, %v47_v6  ;;  %v532_v61 = vmov 2475754826   ;;  %v533_v63 = vmov 2131351028   ;;  %v535_v3 = vmov 920167782   ;;  %p501_p3 = scmp.lt.s32.totalorder %s389_s3, %s389_s3 }
  0x2c   :  { %108 = vmatpush1.bf16.msra.mxu0 %v440_v7  ;;  %v150_v21 = vsub.s32 0, %v149_v20  ;;  %v154_v23 = vsub.s32 1, %v149_v20  ;;  %s496_s19 = scalar_lea.vmem %s389_s3, 256 }
  0x2d   :  { %v49_v10 = vpack.c.bf16 %v48_v8, %v48_v8  ;;  %109 = vmatprep.subr.bf16.mxu0 %v441_v9  ;;  %p497_p2 = scmp.ne.s32.totalorder %s389_s3, %s496_s19  ;;  %p502_p4 = scmp.lt.s32.totalorder %s496_s19, %s496_s19 }
  0x2e   :  { %v151_v25 = vrot.slane %v146_v22, %v150_v21  ;;  %v155_v26 = vrot.slane %v146_v22, %v154_v23  ;;  %v165_v27 = vrot.slane %v160_v24, %v150_v21  ;;  %v169_v29 = vrot.slane %v160_v24, %v154_v23 }
  0x2f   :  { %54 = vrot.lane.b32.xlu0 %v49_v10, %s529_s1  ;;  %v50_v12 = vunpack.c.l.bf16 %v49_v10  ;;  %v536_v10 = vmov 1326507024   ;;  %p503_p5 = por %p502_p4, %p501_p3 }
  0x30   :  { %110 = vmatpush1.bf16.msra.mxu0 %v443_v11 }
  0x31   :  { %v51_v13 = vsub.f32 %v48_v8, %v50_v12  ;;  %p504_p6 = pnand %p503_p5, %p497_p2 }
  0x33   :  { %v52_v14 = vpack.c.bf16 %v51_v13, %v51_v13 }
  0x35   :  { %57 = vrot.lane.b32.xlu0 %v52_v14, %s530_s14 }
  0xa1   :  { %v55_v15 = vpop.permute.xlu0 %54 }
  0xa2   :  { %v62_v16 = vsel %vm59_vm0, %v46_v1, %v55_v15  ;;  %v534_v1 = vmov 2102212464  }
  0xa7   :  { %v58_v17 = vpop.permute.xlu0 %57 }
  0xa8   :  { %v65_v18 = vsel %vm63_vm1, %v62_v16, %v58_v17 }
  0xa9   :  { %404 = vmatmul.mubr.msk.bf16.vlgmr.msra.gmra.mrb[0].mxu0 %vm102_vm2, %v65_v18 }
 0x17c   :  { %v139_v28 = vpop.f32.mrb[0].mxu0 }
 0x17d   :  { %v158_v30 = vmul.f32 %v151_v25, %v139_v28  ;;  %v141_v31 = vpop.f32.mrb[1].mxu0 }
 0x17e   :  { %v159_v32 = vmul.f32 %v155_v26, %v141_v31  ;;  %v143_v33 = vpop.f32.mrb[2].mxu0 }
 0x17f   :  { %v600_v34 = vsub.f32 %v158_v30, %v165_v27  ;;  %v144_v35 = vpop.f32.mrb[3].mxu0 }
 0x180   :  { %v602_v36 = vsub.f32 %v159_v32, %v169_v29 }
 0x181   :  { %v174_v37 = vand.u32 2147483647, %v600_v34  ;;  %v177_v38 = vand.u32 2139095040, %v600_v34  ;;  %vm176_vm1 = vcmp.lt.s32.totalorder %v600_v34, 0 }
 0x182   :  { %v280_v39 = vand.u32 2139095040, %v602_v36  ;;  %v277_v42 = vand.u32 2147483647, %v602_v36 }
 0x183   :  { %v178_v40 = vshrl.u32 %v177_v38, 23  ;;  %v181_v41 = vand.u32 8388607, %v174_v37  ;;  %vm655_vm2 = vcmp.le.f32.partialorder %v174_v37, 0.7853982 }
 0x184   :  { %v281_v43 = vshrl.u32 %v280_v39, 23  ;;  %v612_v48 = vand.u32 8388607, %v277_v42 }
 0x185   :  { %v405_v44 = vadd.s32 4294967169, %v178_v40  ;;  %v182_v47 = vor.u32 8388608, %v181_v41 }
 0x186   :  { %v409_v45 = vadd.s32 4294967169, %v281_v43  ;;  %v285_v55 = vor.u32 8388608, %v612_v48 }
 0x187   :  { %v184_v46 = vadd.s32 1, %v405_v44  ;;  %v614_v54 = vshll.u32 %v182_v47, 8 }
 0x188   :  { %v287_v49 = vadd.s32 1, %v409_v45 }
 0x189   :  { %vm185_vm3 = vcmp.gt.s32.totalorder %v184_v46, 0 }
 0x18a   :  { %v186_v50 = vsel %vm185_vm3, %v184_v46, 0  ;;  %vm288_vm4 = vcmp.gt.s32.totalorder %v287_v49, 0  ;;  %vm279_vm3 = vcmp.lt.s32.totalorder %v602_v36, 0 }
 0x18b   :  { %v187_v51 = vshrl.u32 %v186_v50, 5  ;;  %v188_v52 = vand.u32 31, %v186_v50  ;;  %v289_v53 = vsel %vm288_vm4, %v287_v49, 0  ;;  %v325_v49 = vshll.u32 %v285_v55, 8 }
 0x18c   :  { %v617_v59 = vshrl.u32 %v289_v53, 5  ;;  %v291_v60 = vand.u32 31, %v289_v53  ;;  %vm667_vm4 = vcmp.le.f32.partialorder %v277_v42, 0.7853982 }
 0x18d   :  { %v189_v56 = vsub.s32 32, %v188_v52  ;;  %v191_v58 = vshll.u32 %v531_v57, %v188_v52  ;;  %v194_v62 = vshll.u32 %v532_v61, %v188_v52  ;;  %v197_v0 = vshll.u32 %v533_v63, %v188_v52 }
 0x18e   :  { %v200_v2 = vshll.u32 %v534_v1, %v188_v52  ;;  %v203_v4 = vshll.u32 %v535_v3, %v188_v52  ;;  %vm206_vm5 = vcmp.lt.s32.totalorder %v187_v51, 1  ;;  %vm207_vm6 = vcmp.lt.s32.totalorder %v187_v51, 2 }
 0x18f   :  { %v192_v5 = vshrl.u32 %v532_v61, %v189_v56  ;;  %v195_v6 = vshrl.u32 %v533_v63, %v189_v56  ;;  %v198_v7 = vshrl.u32 %v534_v1, %v189_v56  ;;  %v190_v8 = vshrl.u32 %v531_v57, %v189_v56 }
 0x190   :  { %v201_v9 = vshrl.u32 %v535_v3, %v189_v56  ;;  %v204_v11 = vshrl.u32 %v536_v10, %v189_v56  ;;  %v292_v15 = vsub.s32 32, %v291_v60  ;;  %vm208_vm7 = vcmp.lt.s32.totalorder %v187_v51, 3 }
 0x191   :  { %v193_v12 = vor.u32 %v192_v5, %v191_v58  ;;  %v196_v13 = vor.u32 %v195_v6, %v194_v62  ;;  %v199_v14 = vor.u32 %v198_v7, %v197_v0  ;;  %vm209_vm8 = vcmp.lt.s32.totalorder %v187_v51, 4 }
 0x192   :  { %v202_v16 = vor.u32 %v201_v9, %v200_v2  ;;  %v205_v17 = vor.u32 %v204_v11, %v203_v4  ;;  %v294_v25 = vshll.u32 %v531_v57, %v291_v60  ;;  %v295_v28 = vshrl.u32 %v532_v61, %v292_v15 }
 0x193   :  { %v210_v18 = vsel %vm206_vm5, %v190_v8, %v193_v12  ;;  %v211_v19 = vsel %vm209_vm8, %v199_v14, 2102212464  ;;  %v214_v20 = vsel %vm206_vm5, %v193_v12, %v196_v13  ;;  %v218_v21 = vsel %vm206_vm5, %v196_v13, %v199_v14 }
 0x194   :  { %v212_v22 = vsel %vm208_vm7, %v196_v13, %v211_v19  ;;  %v215_v23 = vsel %vm209_vm8, %v202_v16, 920167782  ;;  %v219_v24 = vsel %vm209_vm8, %v205_v17, 1326507024  ;;  %v297_v29 = vshll.u32 %v532_v61, %v291_v60 }
 0x195   :  { %v216_v26 = vsel %vm208_vm7, %v199_v14, %v215_v23  ;;  %v220_v27 = vsel %vm208_vm7, %v202_v16, %v219_v24  ;;  %v213_v30 = vsel %vm207_vm6, %v210_v18, %v212_v22  ;;  %v298_v33 = vshrl.u32 %v533_v63, %v292_v15 }
 0x196   :  { %v217_v31 = vsel %vm207_vm6, %v214_v20, %v216_v26  ;;  %v221_v32 = vsel %vm207_vm6, %v218_v21, %v220_v27  ;;  %v296_v41 = vor.u32 %v295_v28, %v294_v25  ;;  %v300_v44 = vshll.u32 %v533_v63, %v291_v60 }
 0x197   :  { %v626_v35 = vmul.u32.u64.low %v614_v54, %v221_v32  ;;  %v627_v38 = vmul.u32.u64.high %v614_v54, %v221_v32, %v626_v35  ;;  %v630_v39 = vmul.u32.u64.low %v614_v54, %v217_v31  ;;  %v631_v40 = vmul.u32.u64.high %v614_v54, %v217_v31, %v630_v39 }
 0x198   :  { %v299_v43 = vor.u32 %v298_v33, %v297_v29  ;;  %v301_v45 = vshrl.u32 %v534_v1, %v292_v15  ;;  %v303_v46 = vshll.u32 %v534_v1, %v291_v60  ;;  %v304_v47 = vshrl.u32 %v535_v3, %v292_v15 }
 0x199   :  { %v307_v48 = vshrl.u32 %v536_v10, %v292_v15  ;;  %v229_v50 = vmul.u32 %v614_v54, %v213_v30  ;;  %v293_v51 = vshrl.u32 %v531_v57, %v292_v15  ;;  %v306_v53 = vshll.u32 %v535_v3, %v291_v60 }
 0x19a   :  { %v302_v52 = vor.u32 %v301_v45, %v300_v44  ;;  %vm231_vm9 = vc.u32 %v627_v38, %v630_v39  ;;  %v232_v56 = vadd.s32 1, %v631_v40  ;;  %v305_v58 = vor.u32 %v304_v47, %v303_v46 }
 0x19b   :  { %vm309_vm10 = vcmp.lt.s32.totalorder %v617_v59, 1  ;;  %v308_v61 = vor.u32 %v307_v48, %v306_v53  ;;  %vm311_vm11 = vcmp.lt.s32.totalorder %v617_v59, 3  ;;  %vm312_vm12 = vcmp.lt.s32.totalorder %v617_v59, 4 }
 0x19c   :  { %v317_v62 = vsel %vm309_vm10, %v296_v41, %v299_v43  ;;  %v233_v55 = vsel %vm231_vm9, %v232_v56, %v631_v40  ;;  %v314_v63 = vsel %vm312_vm12, %v302_v52, 2102212464  ;;  %v318_v54 = vsel %vm312_vm12, %v305_v58, 920167782 }
 0x19d   :  { %v321_v57 = vsel %vm309_vm10, %v299_v43, %v302_v52  ;;  %v234_v0 = vadd.s32 %v233_v55, %v229_v50  ;;  %vm310_vm13 = vcmp.lt.s32.totalorder %v617_v59, 2  ;;  %v319_v60 = vsel %vm311_vm11, %v302_v52, %v318_v54 }
 0x19e   :  { %v322_v1 = vsel %vm312_vm12, %v308_v61, 1326507024  ;;  %v313_v2 = vsel %vm309_vm10, %v293_v51, %v296_v41  ;;  %v315_v3 = vsel %vm311_vm11, %v299_v43, %v314_v63  ;;  %v320_v4 = vsel %vm310_vm13, %v317_v62, %v319_v60 }
 0x19f   :  { %v323_v5 = vsel %vm311_vm11, %v305_v58, %v322_v1  ;;  %v235_v6 = vadd.s32 536870912, %v234_v0  ;;  %v641_v8 = vmul.u32.u64.low %v325_v49, %v320_v4  ;;  %v642_v9 = vmul.u32.u64.high %v325_v49, %v320_v4, %v641_v8 }
 0x1a0   :  { %v324_v7 = vsel %vm310_vm13, %v321_v57, %v323_v5  ;;  %v316_v13 = vsel %vm310_vm13, %v313_v2, %v315_v3  ;;  %v230_v29 = vadd.s32 %v630_v39, %v627_v38  ;;  %vm266_vm8 = vweird.f32 %v600_v34 }
 0x1a1   :  { %v644_v10 = vmul.u32.u64.low %v325_v49, %v324_v7  ;;  %v645_v11 = vmul.u32.u64.high %v325_v49, %v324_v7, %v644_v10  ;;  %v236_v12 = vshrl.u32 %v235_v6, 30  ;;  %v335_v15 = vadd.s32 1, %v642_v9 }
 0x1a2   :  { %v332_v59 = vmul.u32 %v325_v49, %v316_v13  ;;  %vm369_vm12 = vweird.f32 %v602_v36 }
 0x1a3   :  { %v237_v14 = vshll.u32 %v236_v12, 30  ;;  %vm334_vm14 = vc.u32 %v645_v11, %v641_v8  ;;  %v333_v50 = vadd.s32 %v641_v8, %v645_v11  ;;  %v260_v54 = vsub.s32 4, %v236_v12 }
 0x1a4   :  { %v336_v17 = vsel %vm334_vm14, %v335_v15, %v642_v9 }
 0x1a5   :  { %v238_v16 = vsub.s32 %v234_v0, %v237_v14  ;;  %v337_v18 = vadd.s32 %v336_v17, %v332_v59  ;;  %v261_v2 = vsel %vm176_vm1, %v260_v54, %v236_v12 }
 0x1a6   :  { %v263_v5 = vsel %vm655_vm2, 0, %v261_v2 }
 0x1a7   :  { %v240_v19 = vsub.s32 0, %v238_v16  ;;  %v338_v20 = vadd.s32 536870912, %v337_v18  ;;  %v267_v8 = vand.u32 3, %v263_v5 }
 0x1a9   :  { %v406_v21 = vmin.u32 %v240_v19, %v238_v16  ;;  %v339_v22 = vshrl.u32 %v338_v20, 30  ;;  %vm272_vm5 = vcmp.eq.s32.totalorder %v267_v8, 2  ;;  %vm269_vm6 = vcmp.eq.s32.totalorder %v267_v8, 0 }
 0x1aa   :  { %vm268_vm7 = vcmp.lt.s32.totalorder %v267_v8, 2 }
 0x1ab   :  { %v242_v23 = vclz %v406_v21  ;;  %v340_v24 = vshll.u32 %v339_v22, 30  ;;  %v363_v7 = vsub.s32 4, %v339_v22 }
 0x1ad   :  { %v407_v25 = vadd.s32 4294967294, %v242_v23  ;;  %v341_v26 = vsub.s32 %v337_v18, %v340_v24  ;;  %v364_v13 = vsel %vm279_vm3, %v363_v7, %v339_v22 }
 0x1ae   :  { %v366_v59 = vsel %vm667_vm4, 0, %v364_v13 }
 0x1af   :  { %vm408_vm15 = vcmp.lt.s32.totalorder %v407_v25, 0  ;;  %v343_v28 = vsub.s32 0, %v341_v26  ;;  %v370_v18 = vand.u32 3, %v366_v59 }
 0x1b0   :  { %v245_v27 = vsel %vm408_vm15, 0, %v407_v25 }
 0x1b1   :  { %v246_v30 = vsub.s32 32, %v245_v27  ;;  %v250_v31 = vsub.s32 4294967266, %v245_v27  ;;  %v410_v32 = vmin.u32 %v343_v28, %v341_v26  ;;  %v247_v33 = vshll.u32 %v238_v16, %v245_v27 }
 0x1b2   :  { %vm375_vm9 = vcmp.eq.s32.totalorder %v370_v18, 2  ;;  %vm372_vm10 = vcmp.eq.s32.totalorder %v370_v18, 0  ;;  %vm371_vm11 = vcmp.lt.s32.totalorder %v370_v18, 2 }
 0x1b3   :  { %v248_v35 = vshrl.u32 %v230_v29, %v246_v30  ;;  %v251_v40 = vadd.s32 127, %v250_v31  ;;  %v345_v41 = vclz %v410_v32 }
 0x1b5   :  { %v249_v43 = vor.u32 %v248_v35, %v247_v33  ;;  %v252_v44 = vshll.u32 %v251_v40, 23  ;;  %v411_v45 = vadd.s32 4294967294, %v345_v41 }
 0x1b7   :  { %v253_v46 = vor.u32 4788187, %v252_v44  ;;  %vm412_vm0 = vcmp.lt.s32.totalorder %v411_v45, 0  ;;  %v256_v48 = vcvt.s32.f32 %v249_v43 }
 0x1b8   :  { %v348_v49 = vsel %vm412_vm0, 0, %v411_v45 }
 0x1b9   :  { %v254_v47 = vand.u32 2147483647, %v253_v46  ;;  %v349_v51 = vsub.s32 32, %v348_v49  ;;  %v353_v52 = vsub.s32 4294967266, %v348_v49  ;;  %v350_v39 = vshll.u32 %v341_v26, %v348_v49 }
 0x1bb   :  { %v257_v38 = vmul.f32 %v256_v48, %v254_v47  ;;  %v351_v53 = vshrl.u32 %v333_v50, %v349_v51  ;;  %v354_v56 = vadd.s32 127, %v353_v52 }
 0x1bd   :  { %v258_v58 = vxor.u32 2147483648, %v257_v38  ;;  %v352_v61 = vor.u32 %v351_v53, %v350_v39  ;;  %v355_v62 = vshll.u32 %v354_v56, 23 }
 0x1bf   :  { %v259_v55 = vsel %vm176_vm1, %v258_v58, %v257_v38  ;;  %v356_v57 = vor.u32 4788187, %v355_v62  ;;  %v359_v1 = vcvt.s32.f32 %v352_v61 }
 0x1c0   :  { %v262_v0 = vsel %vm655_vm2, %v600_v34, %v259_v55 }
 0x1c1   :  { %444 = vcosq.f32 %v262_v0  ;;  %v357_v60 = vand.u32 2147483647, %v356_v57 }
 0x1c2   :  { %446 = vsinq.f32 %v262_v0 }
 0x1c3   :  { %v360_v3 = vmul.f32 %v359_v1, %v357_v60 }
 0x1c5   :  { %v361_v4 = vxor.u32 2147483648, %v360_v3 }
 0x1c7   :  { %v362_v37 = vsel %vm279_vm3, %v361_v4, %v360_v3 }
 0x1c8   :  { %v365_v9 = vsel %vm667_vm4, %v602_v36, %v362_v37 }
 0x1c9   :  { %448 = vcosq.f32 %v365_v9 }
 0x1ca   :  { %450 = vsinq.f32 %v365_v9 }
 0x1cb   :  { %v445_v10 = vpop.eup %444 }
 0x1cc   :  { %v447_v11 = vpop.eup %446  ;;  %v273_v12 = vxor.u32 2147483648, %v445_v10 }
 0x1cd   :  { %v270_v14 = vxor.u32 2147483648, %v447_v11 }
 0x1ce   :  { %v274_v15 = vsel %vm272_vm5, %v273_v12, %v447_v11 }
 0x1cf   :  { %v271_v42 = vsel %vm269_vm6, %v445_v10, %v270_v14 }
 0x1d0   :  { %v275_v16 = vsel %vm268_vm7, %v271_v42, %v274_v15 }
 0x1d1   :  { %v276_v17 = vsel %vm266_vm8, nan, %v275_v16 }
 0x1d2   :  { %380 = vst [vmem:[#allocation7] sm:$0xff] %v276_v17 }
 0x1d3   :  { %v449_v19 = vpop.eup %448 }
 0x1d4   :  { %v451_v20 = vpop.eup %450  ;;  %v376_v21 = vxor.u32 2147483648, %v449_v19 }
 0x1d5   :  { %v373_v23 = vxor.u32 2147483648, %v451_v20 }
 0x1d6   :  { %v377_v22 = vsel %vm375_vm9, %v376_v21, %v451_v20 }
 0x1d7   :  { %v374_v24 = vsel %vm372_vm10, %v449_v19, %v373_v23 }
 0x1d8   :  { %v378_v25 = vsel %vm371_vm11, %v374_v24, %v377_v22 }
 0x1d9   :  { %v379_v34 = vsel %vm369_vm12, nan, %v378_v25 }
 0x1da   :  { %381 = vst [vmem:[#allocation7 + $0x8] sm:$0xff] %v379_v34 }
 0x1db   :  { %507 = shalt.err (!%p504_p6)
}
 0x1dc   :  { %s508_s22 = scalar_lea.hbm %s694_s4, 256 }
 0x1dd   :  { %p509_p7 = scmp.ne.s32.totalorder %s694_s4, %s508_s22  ;;  %p512_p8 = scmp.lt.u32.totalorder %s508_s22, %s694_s4 }
 0x1df   :  { %p514_p9 = pnand %p512_p8, %p509_p7 }
 0x1e1   :  { %517 = shalt.err (!%p514_p9)
}
 0x1e2   :  { %391 = dma.vmem_to_hbm [thread:$0]  %s389_s3, 256, %s694_s4, [#allocation4]  }
 0x1e3   :  { %522 = dma.done.wait [#allocation4], 256  }
 0x1e4   :  { %523 = vsyncadd [#allocation4], 4294967040 }
 0x1e5   :  { %395 = vsyncpa [#allocation3], 1 }
 0x1e6   :  { %396 = vsyncpa [#allocation6], 1 }
 0x1e7   :  { %397 = vsyncpa [#allocation4], 1 }

// kernel: tpu_custom_call.1
= control target key start
LH: loop header
LB: loop body
LE: loop exit
PB: predicated region body
PF: predicated region fallthrough
CT: control target
= control target key end

     0   :  { %9 = vsyncpa [#allocation3], 0  ;;  %s690_s0 = inlined_call_operand.hbm [shape: f32[8,16], index: 0, kind: input, shape index: {}]   ;;  %s691_s1 = inlined_call_operand.hbm [shape: bf16[48,256], index: 1, kind: input, shape index: {}]   ;;  %s692_s2 = inlined_call_operand.vmem [shape: f32[1,256], index: 2, kind: input, shape index: {}]   ;;  %s693_s3 = inlined_call_operand.vmem [shape: f32[1,256], index: 3, kind: input, shape index: {}]   ;;  %s694_s4 = inlined_call_operand.hbm [shape: f32[8,256], index: 4, kind: output, shape index: {}]  }
   0x1   :  { %10 = vsyncpa [#allocation6], 0 }
   0x2   :  { %11 = vsyncpa [#allocation4], 0  ;;  %s524_s15 = smov [#allocation2]   ;;  %s525_s17 = smov [#allocation5]  }
   0x3   :  { %s18_s16 = sshll.u32 %s524_s15, 4  ;;  %s27_s18 = sshll.u32 %s525_s17, 4  ;;  %s19_s16 = int_to_ptr.vmem [resolvable:$true] %s18_s16  ;;  %s563_s18 = int_to_ptr.vmem [resolvable:$true] %s27_s18 }
   0x4   :  { %s452_s21 = scalar_lea.hbm %s690_s0, 128 }
   0x5   :  { %p453_p0 = scmp.ne.s32.totalorder %s690_s0, %s452_s21  ;;  %p456_p1 = scmp.lt.u32.totalorder %s452_s21, %s690_s0 }
   0x7   :  { %p458_p2 = pnand %p456_p1, %p453_p0 }
   0x9   :  { %461 = shalt.err (!%p458_p2)
}
   0xa   :  { %s462_s26 = scalar_lea.vmem %s19_s16, 128  ;;  %p467_p4 = scmp.lt.s32.totalorder %s19_s16, %s19_s16 }
   0xb   :  { %p463_p3 = scmp.ne.s32.totalorder %s19_s16, %s462_s26  ;;  %p468_p5 = scmp.lt.s32.totalorder %s462_s26, %s462_s26 }
   0xd   :  { %p469_p6 = por %p468_p5, %p467_p4 }
   0xf   :  { %p470_p7 = pnand %p469_p6, %p463_p3 }
  0x11   :  { %473 = shalt.err (!%p470_p7)
}
  0x12   :  { %21 = dma.hbm_to_vmem [thread:$0]  %s690_s0, 128, %s19_s16, [#allocation3]  }
  0x13   :  { %s474_s5 = scalar_lea.hbm %s691_s1, 768 }
  0x14   :  { %p475_p8 = scmp.ne.s32.totalorder %s691_s1, %s474_s5  ;;  %p478_p9 = scmp.lt.u32.totalorder %s474_s5, %s691_s1 }
  0x16   :  { %p480_p10 = pnand %p478_p9, %p475_p8 }
  0x18   :  { %483 = shalt.err (!%p480_p10)
}
  0x19   :  { %s484_s10 = scalar_lea.vmem %s563_s18, 768  ;;  %p489_p12 = scmp.lt.s32.totalorder %s563_s18, %s563_s18 }
  0x1a   :  { %p485_p11 = scmp.ne.s32.totalorder %s563_s18, %s484_s10  ;;  %p490_p13 = scmp.lt.s32.totalorder %s484_s10, %s484_s10 }
  0x1c   :  { %p491_p0 = por %p490_p13, %p489_p12 }
  0x1e   :  { %p492_p1 = pnand %p491_p0, %p485_p11 }
  0x20   :  { %495 = shalt.err (!%p492_p1)
}
  0x21   :  { %s526_s0 = smov 128   ;;  %s527_s11 = smov 8  }
  0x22   :  { %33 = dma.hbm_to_vmem [thread:$0]  %s691_s1, 768, %s563_s18, [#allocation6], %s526_s0, %s526_s0, %s527_s11  }
  0x23   :  { %518 = dma.done.wait [#allocation3], 128  }
  0x24   :  { %519 = vsyncadd [#allocation3], 4294967168 }
  0x25   :  { %520 = dma.done.wait [#allocation6], 768  }
  0x26   :  { %521 = vsyncadd [#allocation6], 4294966528  ;;  %v45_v0 = vld [vmem:[#allocation2] sm:$0xff]  ;;  %v435_v2 = vld [vmem:[#allocation5 + $0x4] ss:$8 sps:$4 sm:$0xff]   ;;  %v528_v5 = vmov 0   ;;  %v148_v19 = vlaneseq }
  0x27   :  { %v46_v1 = vpack.c.bf16 %v45_v0, %v45_v0  ;;  %v437_v3 = vld [vmem:[#allocation5] ss:$8 sps:$4 sm:$0xff]   ;;  %v438_v4 = vld [vmem:[#allocation5 + $0x14] ss:$8 sps:$4 sm:$0xff]   ;;  %137 = vmatprep.mubr.bf16.mxu0 %v528_v5  ;;  %105 = vmatprep.subr.bf16.mxu0 %v435_v2  ;;  %v440_v7 = vld [vmem:[#allocation5 + $0x10] ss:$8 sps:$4 sm:$0xff]  }
  0x28   :  { %106 = vmatpush1.bf16.msra.mxu0 %v437_v3  ;;  %v441_v9 = vld [vmem:[#allocation5 + $0x24] ss:$8 sps:$4 sm:$0xff]   ;;  %v443_v11 = vld [vmem:[#allocation5 + $0x20] ss:$8 sps:$4 sm:$0xff]   ;;  %s529_s1 = smov 16   ;;  %s530_s14 = smov 32  }
  0x29   :  { %v47_v6 = vunpack.c.l.bf16 %v46_v1  ;;  %107 = vmatprep.subr.bf16.mxu0 %v438_v4  ;;  %vm59_vm0 = vcmask 130048   ;;  %vm63_vm1 = vcmask 261120   ;;  %vm102_vm2 = vcmask 392192   ;;  %v146_v22 = vld [vmem:[%s692_s2] sm:$0x3]  ;;  %s537_s2 = smov [#allocation7]  }
  0x2a   :  { %v149_v20 = vshrl.u32 %v148_v19, 7  ;;  %v160_v24 = vld [vmem:[%s693_s3] sm:$0x3]  ;;  %v531_v57 = vmov 683565275   ;;  %s388_s3 = sshll.u32 %s537_s2, 4  ;;  %s389_s3 = int_to_ptr.vmem [resolvable:$true] %s388_s3 }
  0x2b   :  { %v48_v8 = vsub.f32 %v45_v0, %v47_v6  ;;  %v532_v61 = vmov 2475754826   ;;  %v533_v63 = vmov 2131351028   ;;  %v535_v3 = vmov 920167782   ;;  %p501_p3 = scmp.lt.s32.totalorder %s389_s3, %s389_s3 }
  0x2c   :  { %108 = vmatpush1.bf16.msra.mxu0 %v440_v7  ;;  %v150_v21 = vsub.s32 0, %v149_v20  ;;  %v154_v23 = vsub.s32 1, %v149_v20  ;;  %s496_s19 = scalar_lea.vmem %s389_s3, 256 }
  0x2d   :  { %v49_v10 = vpack.c.bf16 %v48_v8, %v48_v8  ;;  %109 = vmatprep.subr.bf16.mxu0 %v441_v9  ;;  %p497_p2 = scmp.ne.s32.totalorder %s389_s3, %s496_s19  ;;  %p502_p4 = scmp.lt.s32.totalorder %s496_s19, %s496_s19 }
  0x2e   :  { %v151_v25 = vrot.slane %v146_v22, %v150_v21  ;;  %v155_v26 = vrot.slane %v146_v22, %v154_v23  ;;  %v165_v27 = vrot.slane %v160_v24, %v150_v21  ;;  %v169_v29 = vrot.slane %v160_v24, %v154_v23 }
  0x2f   :  { %54 = vrot.lane.b32.xlu0 %v49_v10, %s529_s1  ;;  %v50_v12 = vunpack.c.l.bf16 %v49_v10  ;;  %v536_v10 = vmov 1326507024   ;;  %p503_p5 = por %p502_p4, %p501_p3 }
  0x30   :  { %110 = vmatpush1.bf16.msra.mxu0 %v443_v11 }
  0x31   :  { %v51_v13 = vsub.f32 %v48_v8, %v50_v12  ;;  %p504_p6 = pnand %p503_p5, %p497_p2 }
  0x33   :  { %v52_v14 = vpack.c.bf16 %v51_v13, %v51_v13 }
  0x35   :  { %57 = vrot.lane.b32.xlu0 %v52_v14, %s530_s14 }
  0xa1   :  { %v55_v15 = vpop.permute.xlu0 %54 }
  0xa2   :  { %v62_v16 = vsel %vm59_vm0, %v46_v1, %v55_v15  ;;  %v534_v1 = vmov 2102212464  }
  0xa7   :  { %v58_v17 = vpop.permute.xlu0 %57 }
  0xa8   :  { %v65_v18 = vsel %vm63_vm1, %v62_v16, %v58_v17 }
  0xa9   :  { %404 = vmatmul.mubr.msk.bf16.vlgmr.msra.gmra.mrb[0].mxu0 %vm102_vm2, %v65_v18 }
 0x17c   :  { %v139_v28 = vpop.f32.mrb[0].mxu0 }
 0x17d   :  { %v158_v30 = vmul.f32 %v151_v25, %v139_v28  ;;  %v141_v31 = vpop.f32.mrb[1].mxu0 }
 0x17e   :  { %v159_v32 = vmul.f32 %v155_v26, %v141_v31  ;;  %v143_v33 = vpop.f32.mrb[2].mxu0 }
 0x17f   :  { %v600_v34 = vsub.f32 %v158_v30, %v165_v27  ;;  %v144_v35 = vpop.f32.mrb[3].mxu0 }
 0x180   :  { %v602_v36 = vsub.f32 %v159_v32, %v169_v29 }
 0x181   :  { %v174_v37 = vand.u32 2147483647, %v600_v34  ;;  %v177_v38 = vand.u32 2139095040, %v600_v34  ;;  %vm176_vm1 = vcmp.lt.s32.totalorder %v600_v34, 0 }
 0x182   :  { %v280_v39 = vand.u32 2139095040, %v602_v36  ;;  %v277_v42 = vand.u32 2147483647, %v602_v36 }
 0x183   :  { %v178_v40 = vshrl.u32 %v177_v38, 23  ;;  %v181_v41 = vand.u32 8388607, %v174_v37  ;;  %vm655_vm2 = vcmp.le.f32.partialorder %v174_v37, 0.7853982 }
 0x184   :  { %v281_v43 = vshrl.u32 %v280_v39, 23  ;;  %v612_v48 = vand.u32 8388607, %v277_v42 }
 0x185   :  { %v405_v44 = vadd.s32 4294967169, %v178_v40  ;;  %v182_v47 = vor.u32 8388608, %v181_v41 }
 0x186   :  { %v409_v45 = vadd.s32 4294967169, %v281_v43  ;;  %v285_v55 = vor.u32 8388608, %v612_v48 }
 0x187   :  { %v184_v46 = vadd.s32 1, %v405_v44  ;;  %v614_v54 = vshll.u32 %v182_v47, 8 }
 0x188   :  { %v287_v49 = vadd.s32 1, %v409_v45 }
 0x189   :  { %vm185_vm3 = vcmp.gt.s32.totalorder %v184_v46, 0 }
 0x18a   :  { %v186_v50 = vsel %vm185_vm3, %v184_v46, 0  ;;  %vm288_vm4 = vcmp.gt.s32.totalorder %v287_v49, 0  ;;  %vm279_vm3 = vcmp.lt.s32.totalorder %v602_v36, 0 }
 0x18b   :  { %v187_v51 = vshrl.u32 %v186_v50, 5  ;;  %v188_v52 = vand.u32 31, %v186_v50  ;;  %v289_v53 = vsel %vm288_vm4, %v287_v49, 0  ;;  %v325_v49 = vshll.u32 %v285_v55, 8 }
 0x18c   :  { %v617_v59 = vshrl.u32 %v289_v53, 5  ;;  %v291_v60 = vand.u32 31, %v289_v53  ;;  %vm667_vm4 = vcmp.le.f32.partialorder %v277_v42, 0.7853982 }
 0x18d   :  { %v189_v56 = vsub.s32 32, %v188_v52  ;;  %v191_v58 = vshll.u32 %v531_v57, %v188_v52  ;;  %v194_v62 = vshll.u32 %v532_v61, %v188_v52  ;;  %v197_v0 = vshll.u32 %v533_v63, %v188_v52 }
 0x18e   :  { %v200_v2 = vshll.u32 %v534_v1, %v188_v52  ;;  %v203_v4 = vshll.u32 %v535_v3, %v188_v52  ;;  %vm206_vm5 = vcmp.lt.s32.totalorder %v187_v51, 1  ;;  %vm207_vm6 = vcmp.lt.s32.totalorder %v187_v51, 2 }
 0x18f   :  { %v192_v5 = vshrl.u32 %v532_v61, %v189_v56  ;;  %v195_v6 = vshrl.u32 %v533_v63, %v189_v56  ;;  %v198_v7 = vshrl.u32 %v534_v1, %v189_v56  ;;  %v190_v8 = vshrl.u32 %v531_v57, %v189_v56 }
 0x190   :  { %v201_v9 = vshrl.u32 %v535_v3, %v189_v56  ;;  %v204_v11 = vshrl.u32 %v536_v10, %v189_v56  ;;  %v292_v15 = vsub.s32 32, %v291_v60  ;;  %vm208_vm7 = vcmp.lt.s32.totalorder %v187_v51, 3 }
 0x191   :  { %v193_v12 = vor.u32 %v192_v5, %v191_v58  ;;  %v196_v13 = vor.u32 %v195_v6, %v194_v62  ;;  %v199_v14 = vor.u32 %v198_v7, %v197_v0  ;;  %vm209_vm8 = vcmp.lt.s32.totalorder %v187_v51, 4 }
 0x192   :  { %v202_v16 = vor.u32 %v201_v9, %v200_v2  ;;  %v205_v17 = vor.u32 %v204_v11, %v203_v4  ;;  %v294_v25 = vshll.u32 %v531_v57, %v291_v60  ;;  %v295_v28 = vshrl.u32 %v532_v61, %v292_v15 }
 0x193   :  { %v210_v18 = vsel %vm206_vm5, %v190_v8, %v193_v12  ;;  %v211_v19 = vsel %vm209_vm8, %v199_v14, 2102212464  ;;  %v214_v20 = vsel %vm206_vm5, %v193_v12, %v196_v13  ;;  %v218_v21 = vsel %vm206_vm5, %v196_v13, %v199_v14 }
 0x194   :  { %v212_v22 = vsel %vm208_vm7, %v196_v13, %v211_v19  ;;  %v215_v23 = vsel %vm209_vm8, %v202_v16, 920167782  ;;  %v219_v24 = vsel %vm209_vm8, %v205_v17, 1326507024  ;;  %v297_v29 = vshll.u32 %v532_v61, %v291_v60 }
 0x195   :  { %v216_v26 = vsel %vm208_vm7, %v199_v14, %v215_v23  ;;  %v220_v27 = vsel %vm208_vm7, %v202_v16, %v219_v24  ;;  %v213_v30 = vsel %vm207_vm6, %v210_v18, %v212_v22  ;;  %v298_v33 = vshrl.u32 %v533_v63, %v292_v15 }
 0x196   :  { %v217_v31 = vsel %vm207_vm6, %v214_v20, %v216_v26  ;;  %v221_v32 = vsel %vm207_vm6, %v218_v21, %v220_v27  ;;  %v296_v41 = vor.u32 %v295_v28, %v294_v25  ;;  %v300_v44 = vshll.u32 %v533_v63, %v291_v60 }
 0x197   :  { %v626_v35 = vmul.u32.u64.low %v614_v54, %v221_v32  ;;  %v627_v38 = vmul.u32.u64.high %v614_v54, %v221_v32, %v626_v35  ;;  %v630_v39 = vmul.u32.u64.low %v614_v54, %v217_v31  ;;  %v631_v40 = vmul.u32.u64.high %v614_v54, %v217_v31, %v630_v39 }
 0x198   :  { %v299_v43 = vor.u32 %v298_v33, %v297_v29  ;;  %v301_v45 = vshrl.u32 %v534_v1, %v292_v15  ;;  %v303_v46 = vshll.u32 %v534_v1, %v291_v60  ;;  %v304_v47 = vshrl.u32 %v535_v3, %v292_v15 }
 0x199   :  { %v307_v48 = vshrl.u32 %v536_v10, %v292_v15  ;;  %v229_v50 = vmul.u32 %v614_v54, %v213_v30  ;;  %v293_v51 = vshrl.u32 %v531_v57, %v292_v15  ;;  %v306_v53 = vshll.u32 %v535_v3, %v291_v60 }
 0x19a   :  { %v302_v52 = vor.u32 %v301_v45, %v300_v44  ;;  %vm231_vm9 = vc.u32 %v627_v38, %v630_v39  ;;  %v232_v56 = vadd.s32 1, %v631_v40  ;;  %v305_v58 = vor.u32 %v304_v47, %v303_v46 }
 0x19b   :  { %vm309_vm10 = vcmp.lt.s32.totalorder %v617_v59, 1  ;;  %v308_v61 = vor.u32 %v307_v48, %v306_v53  ;;  %vm311_vm11 = vcmp.lt.s32.totalorder %v617_v59, 3  ;;  %vm312_vm12 = vcmp.lt.s32.totalorder %v617_v59, 4 }
 0x19c   :  { %v317_v62 = vsel %vm309_vm10, %v296_v41, %v299_v43  ;;  %v233_v55 = vsel %vm231_vm9, %v232_v56, %v631_v40  ;;  %v314_v63 = vsel %vm312_vm12, %v302_v52, 2102212464  ;;  %v318_v54 = vsel %vm312_vm12, %v305_v58, 920167782 }
 0x19d   :  { %v321_v57 = vsel %vm309_vm10, %v299_v43, %v302_v52  ;;  %v234_v0 = vadd.s32 %v233_v55, %v229_v50  ;;  %vm310_vm13 = vcmp.lt.s32.totalorder %v617_v59, 2  ;;  %v319_v60 = vsel %vm311_vm11, %v302_v52, %v318_v54 }
 0x19e   :  { %v322_v1 = vsel %vm312_vm12, %v308_v61, 1326507024  ;;  %v313_v2 = vsel %vm309_vm10, %v293_v51, %v296_v41  ;;  %v315_v3 = vsel %vm311_vm11, %v299_v43, %v314_v63  ;;  %v320_v4 = vsel %vm310_vm13, %v317_v62, %v319_v60 }
 0x19f   :  { %v323_v5 = vsel %vm311_vm11, %v305_v58, %v322_v1  ;;  %v235_v6 = vadd.s32 536870912, %v234_v0  ;;  %v641_v8 = vmul.u32.u64.low %v325_v49, %v320_v4  ;;  %v642_v9 = vmul.u32.u64.high %v325_v49, %v320_v4, %v641_v8 }
 0x1a0   :  { %v324_v7 = vsel %vm310_vm13, %v321_v57, %v323_v5  ;;  %v316_v13 = vsel %vm310_vm13, %v313_v2, %v315_v3  ;;  %v230_v29 = vadd.s32 %v630_v39, %v627_v38  ;;  %vm266_vm8 = vweird.f32 %v600_v34 }
 0x1a1   :  { %v644_v10 = vmul.u32.u64.low %v325_v49, %v324_v7  ;;  %v645_v11 = vmul.u32.u64.high %v325_v49, %v324_v7, %v644_v10  ;;  %v236_v12 = vshrl.u32 %v235_v6, 30  ;;  %v335_v15 = vadd.s32 1, %v642_v9 }
 0x1a2   :  { %v332_v59 = vmul.u32 %v325_v49, %v316_v13  ;;  %vm369_vm12 = vweird.f32 %v602_v36 }
 0x1a3   :  { %v237_v14 = vshll.u32 %v236_v12, 30  ;;  %vm334_vm14 = vc.u32 %v645_v11, %v641_v8  ;;  %v333_v50 = vadd.s32 %v641_v8, %v645_v11  ;;  %v260_v54 = vsub.s32 4, %v236_v12 }
 0x1a4   :  { %v336_v17 = vsel %vm334_vm14, %v335_v15, %v642_v9 }
 0x1a5   :  { %v238_v16 = vsub.s32 %v234_v0, %v237_v14  ;;  %v337_v18 = vadd.s32 %v336_v17, %v332_v59  ;;  %v261_v2 = vsel %vm176_vm1, %v260_v54, %v236_v12 }
 0x1a6   :  { %v263_v5 = vsel %vm655_vm2, 0, %v261_v2 }
 0x1a7   :  { %v240_v19 = vsub.s32 0, %v238_v16  ;;  %v338_v20 = vadd.s32 536870912, %v337_v18  ;;  %v267_v8 = vand.u32 3, %v263_v5 }
 0x1a9   :  { %v406_v21 = vmin.u32 %v240_v19, %v238_v16  ;;  %v339_v22 = vshrl.u32 %v338_v20, 30  ;;  %vm272_vm5 = vcmp.eq.s32.totalorder %v267_v8, 2  ;;  %vm269_vm6 = vcmp.eq.s32.totalorder %v267_v8, 0 }
 0x1aa   :  { %vm268_vm7 = vcmp.lt.s32.totalorder %v267_v8, 2 }
 0x1ab   :  { %v242_v23 = vclz %v406_v21  ;;  %v340_v24 = vshll.u32 %v339_v22, 30  ;;  %v363_v7 = vsub.s32 4, %v339_v22 }
 0x1ad   :  { %v407_v25 = vadd.s32 4294967294, %v242_v23  ;;  %v341_v26 = vsub.s32 %v337_v18, %v340_v24  ;;  %v364_v13 = vsel %vm279_vm3, %v363_v7, %v339_v22 }
 0x1ae   :  { %v366_v59 = vsel %vm667_vm4, 0, %v364_v13 }
 0x1af   :  { %vm408_vm15 = vcmp.lt.s32.totalorder %v407_v25, 0  ;;  %v343_v28 = vsub.s32 0, %v341_v26  ;;  %v370_v18 = vand.u32 3, %v366_v59 }
 0x1b0   :  { %v245_v27 = vsel %vm408_vm15, 0, %v407_v25 }
 0x1b1   :  { %v246_v30 = vsub.s32 32, %v245_v27  ;;  %v250_v31 = vsub.s32 4294967266, %v245_v27  ;;  %v410_v32 = vmin.u32 %v343_v28, %v341_v26  ;;  %v247_v33 = vshll.u32 %v238_v16, %v245_v27 }
 0x1b2   :  { %vm375_vm9 = vcmp.eq.s32.totalorder %v370_v18, 2  ;;  %vm372_vm10 = vcmp.eq.s32.totalorder %v370_v18, 0  ;;  %vm371_vm11 = vcmp.lt.s32.totalorder %v370_v18, 2 }
 0x1b3   :  { %v248_v35 = vshrl.u32 %v230_v29, %v246_v30  ;;  %v251_v40 = vadd.s32 127, %v250_v31  ;;  %v345_v41 = vclz %v410_v32 }
 0x1b5   :  { %v249_v43 = vor.u32 %v248_v35, %v247_v33  ;;  %v252_v44 = vshll.u32 %v251_v40, 23  ;;  %v411_v45 = vadd.s32 4294967294, %v345_v41 }
 0x1b7   :  { %v253_v46 = vor.u32 4788187, %v252_v44  ;;  %vm412_vm0 = vcmp.lt.s32.totalorder %v411_v45, 0  ;;  %v256_v48 = vcvt.s32.f32 %v249_v43 }
 0x1b8   :  { %v348_v49 = vsel %vm412_vm0, 0, %v411_v45 }
 0x1b9   :  { %v254_v47 = vand.u32 2147483647, %v253_v46  ;;  %v349_v51 = vsub.s32 32, %v348_v49  ;;  %v353_v52 = vsub.s32 4294967266, %v348_v49  ;;  %v350_v39 = vshll.u32 %v341_v26, %v348_v49 }
 0x1bb   :  { %v257_v38 = vmul.f32 %v256_v48, %v254_v47  ;;  %v351_v53 = vshrl.u32 %v333_v50, %v349_v51  ;;  %v354_v56 = vadd.s32 127, %v353_v52 }
 0x1bd   :  { %v258_v58 = vxor.u32 2147483648, %v257_v38  ;;  %v352_v61 = vor.u32 %v351_v53, %v350_v39  ;;  %v355_v62 = vshll.u32 %v354_v56, 23 }
 0x1bf   :  { %v259_v55 = vsel %vm176_vm1, %v258_v58, %v257_v38  ;;  %v356_v57 = vor.u32 4788187, %v355_v62  ;;  %v359_v1 = vcvt.s32.f32 %v352_v61 }
 0x1c0   :  { %v262_v0 = vsel %vm655_vm2, %v600_v34, %v259_v55 }
 0x1c1   :  { %444 = vcosq.f32 %v262_v0  ;;  %v357_v60 = vand.u32 2147483647, %v356_v57 }
 0x1c2   :  { %446 = vsinq.f32 %v262_v0 }
 0x1c3   :  { %v360_v3 = vmul.f32 %v359_v1, %v357_v60 }
 0x1c5   :  { %v361_v4 = vxor.u32 2147483648, %v360_v3 }
 0x1c7   :  { %v362_v37 = vsel %vm279_vm3, %v361_v4, %v360_v3 }
 0x1c8   :  { %v365_v9 = vsel %vm667_vm4, %v602_v36, %v362_v37 }
 0x1c9   :  { %448 = vcosq.f32 %v365_v9 }
 0x1ca   :  { %450 = vsinq.f32 %v365_v9 }
 0x1cb   :  { %v445_v10 = vpop.eup %444 }
 0x1cc   :  { %v447_v11 = vpop.eup %446  ;;  %v273_v12 = vxor.u32 2147483648, %v445_v10 }
 0x1cd   :  { %v270_v14 = vxor.u32 2147483648, %v447_v11 }
 0x1ce   :  { %v274_v15 = vsel %vm272_vm5, %v273_v12, %v447_v11 }
 0x1cf   :  { %v271_v42 = vsel %vm269_vm6, %v445_v10, %v270_v14 }
 0x1d0   :  { %v275_v16 = vsel %vm268_vm7, %v271_v42, %v274_v15 }
 0x1d1   :  { %v276_v17 = vsel %vm266_vm8, nan, %v275_v16 }
 0x1d2   :  { %380 = vst [vmem:[#allocation7] sm:$0xff] %v276_v17 }
 0x1d3   :  { %v449_v19 = vpop.eup %448 }
 0x1d4   :  { %v451_v20 = vpop.eup %450  ;;  %v376_v21 = vxor.u32 2147483648, %v449_v19 }
 0x1d5   :  { %v373_v23 = vxor.u32 2147483648, %v451_v20 }
 0x1d6   :  { %v377_v22 = vsel %vm375_vm9, %v376_v21, %v451_v20 }
 0x1d7   :  { %v374_v24 = vsel %vm372_vm10, %v449_v19, %v373_v23 }
 0x1d8   :  { %v378_v25 = vsel %vm371_vm11, %v374_v24, %v377_v22 }
 0x1d9   :  { %v379_v34 = vsel %vm369_vm12, nan, %v378_v25 }
 0x1da   :  { %381 = vst [vmem:[#allocation7 + $0x8] sm:$0xff] %v379_v34 }
 0x1db   :  { %507 = shalt.err (!%p504_p6)
}
 0x1dc   :  { %s508_s22 = scalar_lea.hbm %s694_s4, 256 }
 0x1dd   :  { %p509_p7 = scmp.ne.s32.totalorder %s694_s4, %s508_s22  ;;  %p512_p8 = scmp.lt.u32.totalorder %s508_s22, %s694_s4 }
 0x1df   :  { %p514_p9 = pnand %p512_p8, %p509_p7 }
 0x1e1   :  { %517 = shalt.err (!%p514_p9)
}
 0x1e2   :  { %391 = dma.vmem_to_hbm [thread:$0]  %s389_s3, 256, %s694_s4, [#allocation4]  }
 0x1e3   :  { %522 = dma.done.wait [#allocation4], 256  }
 0x1e4   :  { %523 = vsyncadd [#allocation4], 4294967040 }
 0x1e5   :  { %395 = vsyncpa [#allocation3], 1 }
 0x1e6   :  { %396 = vsyncpa [#allocation6], 1 }
 0x1e7   :  { %397 = vsyncpa [#allocation4], 1 }

</bundles_post_ra>
